<compile_context>
chip_gen: v7x
topology: tpu7x:2x2x1
jax: 0.10.0
libtpu: 0.0.40
codegen_flags: <defaults>
</compile_context>

<pallas_src>
import jax
import jax.numpy as jnp
from jax.experimental import pallas as pl
from jax.experimental.pallas import tpu as pltpu


def _round_up(x, m):
    return ((x + m - 1) // m) * m


def fusion_kernel(xa_ref, xv_ref, w1a_ref, w1v_ref, b1_ref, wq_ref, bq_ref,
                  wf_ref, bf_ref, out_ref):
    """One batch tile of the fused CrossModalFusionLayer forward.

    xa_ref  : (TB, Fa)   bf16 audio features
    xv_ref  : (TB, Fv)   bf16 visual features
    w1a_ref : (Fa, 2H)   bf16, [wa | 0]   (zero-padded right half)
    w1v_ref : (Fv, 2H)   bf16, [0 | wv]   (zero-padded left half)
    b1_ref  : (1, 2H)    f32,  [ba | bv]
    wq_ref  : (2H, 2H)   bf16, block-diag [wqa ; wqv]
    bq_ref  : (1, 2H)    f32,  [bqa | bqv]
    wf_ref  : (1, 2H)    f32,  fc_final weight row
    bf_ref  : (1,)       f32,  fc_final bias (SMEM scalar)
    out_ref : (TB, SLAB) f32,  lanes [0,2H)=combined, lanes [2H,SLAB)=final
    """
    H2 = b1_ref.shape[1]          # 2H
    H = H2 // 2
    TB = xa_ref.shape[0]

    # Packed hidden h = [relu(fc_audio(x_a)) | relu(fc_visual(x_v))]:
    # two tiny MXU dots (K = Fa, Fv) accumulating into one 2H-wide register.
    h = (jnp.dot(xa_ref[...], w1a_ref[...], preferred_element_type=jnp.float32)
         + jnp.dot(xv_ref[...], w1v_ref[...], preferred_element_type=jnp.float32)
         + b1_ref[...])
    h = jnp.maximum(h, 0.0)

    # Packed attention logits via the block-diagonal attention weight.
    z = jnp.dot(h.astype(wq_ref.dtype), wq_ref[...],
                preferred_element_type=jnp.float32) + bq_ref[...]

    # Segmented softmax over the two H-lane halves, computed in the packed
    # 2H-lane layout with a lane mask (no 32-lane slices / masked relayouts).
    lane = jax.lax.broadcasted_iota(jnp.int32, (TB, H2), 1)
    is_audio = lane < H
    neg_inf = jnp.float32(-jnp.inf)
    m_a = jnp.max(jnp.where(is_audio, z, neg_inf), axis=-1, keepdims=True)
    m_v = jnp.max(jnp.where(is_audio, neg_inf, z), axis=-1, keepdims=True)
    e = jnp.exp(z - jnp.where(is_audio, m_a, m_v))
    s_a = jnp.sum(jnp.where(is_audio, e, 0.0), axis=-1, keepdims=True)
    s_v = jnp.sum(jnp.where(is_audio, 0.0, e), axis=-1, keepdims=True)
    attn = e / jnp.where(is_audio, s_a, s_v)      # exact divide; not EUP-bound

    # combined = cat([out_audio * attn_audio, out_visual * attn_visual]):
    # already packed -> single full-width VPU multiply.
    combined = h * attn                            # (TB, 2H), f32

    # fc_final has out_features=1: VPU multiply + lane reduction (an MXU pass
    # would waste 127/128 result columns).
    fin = jnp.sum(combined * wf_ref[...], axis=-1, keepdims=True) + bf_ref[0]

    # Single unmasked full-lane-tile store: lanes [0,2H) = combined,
    # lanes [2H,SLAB) = broadcast of the final scalar (wrapper slices lane 2H).
    pad = out_ref.shape[1] - H2
    slab = jnp.concatenate([combined, jnp.broadcast_to(fin, (TB, pad))], axis=1)
    out_ref[...] = slab.astype(out_ref.dtype)


def prepare_params(params):
    """One-time parameter packing (hoisted out of the per-call path)."""
    Fa, H = params["wa"].shape
    Fv = params["wv"].shape[0]
    H2 = 2 * H

    w1a = jnp.zeros((Fa, H2), jnp.float32).at[:, :H].set(params["wa"])
    w1v = jnp.zeros((Fv, H2), jnp.float32).at[:, H:].set(params["wv"])
    b1 = jnp.concatenate([params["ba"], params["bv"]], axis=1)

    wq = jnp.zeros((H2, H2), jnp.float32)
    wq = wq.at[:H, :H].set(params["wqa"]).at[H:, H:].set(params["wqv"])
    bq = jnp.concatenate([params["bqa"], params["bqv"]], axis=1)

    # NOTE: reshape is only a transpose because fc_final has out_features == 1.
    wf = params["wf"].reshape(1, H2)
    bf = params["bf"].reshape(1)

    return dict(
        w1a=w1a.astype(jnp.bfloat16),
        w1v=w1v.astype(jnp.bfloat16),
        b1=b1,
        wq=wq.astype(jnp.bfloat16),
        bq=bq,
        wf=wf,
        bf=bf,
        H=H, Fa=Fa, Fv=Fv,
    )


def cross_modal_fusion(x_audio, x_visual, pk, *, block_b=1024):
    """Returns (final_output [B,1], combined [B,2H]) like the PyTorch module."""
    B, Fa = x_audio.shape
    Fv = x_visual.shape[1]
    H = pk["H"]
    H2 = 2 * H
    SLAB = _round_up(H2 + 1, 128)     # lane-dense merged output width

    # Batch (sublane-axis) tiling: multiple of 8, large tiles to amortize the
    # ~0.35us per-grid-step overhead.
    TB = min(block_b, _round_up(B, 8))
    # v7x has 2 TensorCores per chip: give large single-tile batches >= 2 steps.
    if B > 512 and _round_up(B, 8) <= block_b:
        TB = min(TB, _round_up((B + 1) // 2, 8))
    Bp = _round_up(B, TB)

    xa = x_audio.astype(jnp.bfloat16)
    xv = x_visual.astype(jnp.bfloat16)
    if Bp != B:
        # Padded rows (zeros) flow through safely (softmax denom = H) and are
        # sliced off below.
        xa = jnp.pad(xa, ((0, Bp - B), (0, 0)))
        xv = jnp.pad(xv, ((0, Bp - B), (0, 0)))
    grid = (Bp // TB,)

    slab = pl.pallas_call(
        fusion_kernel,
        grid=grid,
        in_specs=[
            pl.BlockSpec((TB, Fa), lambda i: (i, 0)),            # x_audio tile
            pl.BlockSpec((TB, Fv), lambda i: (i, 0)),            # x_visual tile
            pl.BlockSpec((Fa, H2), lambda i: (0, 0)),            # w1a (resident)
            pl.BlockSpec((Fv, H2), lambda i: (0, 0)),            # w1v (resident)
            pl.BlockSpec((1, H2), lambda i: (0, 0)),             # b1
            pl.BlockSpec((H2, H2), lambda i: (0, 0)),            # wq (resident)
            pl.BlockSpec((1, H2), lambda i: (0, 0)),             # bq
            pl.BlockSpec((1, H2), lambda i: (0, 0)),             # wf row
            pl.BlockSpec(memory_space=pltpu.MemorySpace.SMEM),   # bf scalar
        ],
        out_specs=pl.BlockSpec((TB, SLAB), lambda i: (i, 0)),
        out_shape=jax.ShapeDtypeStruct((Bp, SLAB), jnp.float32),
        compiler_params=pltpu.CompilerParams(
            dimension_semantics=("parallel",)),
    )(xa, xv, pk["w1a"], pk["w1v"], pk["b1"], pk["wq"], pk["bq"],
      pk["wf"], pk["bf"])

    final = slab[:B, H2:H2 + 1]
    combined = slab[:B, :H2]
    return final, combined


def init_params(key, input_size_audio, input_size_visual, hidden_size):
    """PyTorch-Linear-style uniform init. Weights stored [in, out]; biases [1, out]."""
    def linear(k, fan_in, fan_out):
        kw, kb = jax.random.split(k)
        bound = 1.0 / jnp.sqrt(fan_in)
        w = jax.random.uniform(kw, (fan_in, fan_out), jnp.float32, -bound, bound)
        b = jax.random.uniform(kb, (1, fan_out), jnp.float32, -bound, bound)
        return w, b

    k1, k2, k3, k4, k5 = jax.random.split(key, 5)
    wa, ba = linear(k1, input_size_audio, hidden_size)
    wv, bv = linear(k2, input_size_visual, hidden_size)
    wqa, bqa = linear(k3, hidden_size, hidden_size)
    wqv, bqv = linear(k4, hidden_size, hidden_size)
    wf, bf = linear(k5, 2 * hidden_size, 1)
    return dict(wa=wa, ba=ba, wv=wv, bv=bv,
                wqa=wqa, bqa=bqa, wqv=wqv, bqv=bqv,
                wf=wf, bf=bf)


def reference(x_audio, x_visual, p):
    out_a = jax.nn.relu(x_audio @ p["wa"] + p["ba"])
    out_v = jax.nn.relu(x_visual @ p["wv"] + p["bv"])
    attn_a = jax.nn.softmax(out_a @ p["wqa"] + p["bqa"], axis=-1)
    attn_v = jax.nn.softmax(out_v @ p["wqv"] + p["bqv"], axis=-1)
    out_a = out_a * attn_a
    out_v = out_v * attn_v
    combined = jnp.concatenate([out_a, out_v], axis=1)
    final = combined @ p["wf"] + p["bf"]
    return final, combined


if __name__ == "__main__":
    # Small shapes consistent with the module: 5 audio + 5 visual features,
    # hidden_size=32, batch=8.
    B = 8
    input_size_audio = 5
    input_size_visual = 5
    hidden_size = 32

    key = jax.random.PRNGKey(0)
    k_a, k_v, k_p = jax.random.split(key, 3)
    x_audio = jax.random.normal(k_a, (B, input_size_audio), jnp.float32)
    x_visual = jax.random.normal(k_v, (B, input_size_visual), jnp.float32)
    params = init_params(k_p, input_size_audio, input_size_visual, hidden_size)
    packed = prepare_params(params)   # one-time packing (not per forward call)

    final_out, combined = cross_modal_fusion(x_audio, x_visual, packed)
    jax.block_until_ready((final_out, combined))

    ref_final, ref_combined = reference(x_audio, x_visual, params)
    assert final_out.shape == (B, 1)
    assert combined.shape == (B, 2 * hidden_size)
    # bf16 MXU operands => compare against the f32 reference with a bf16-level
    # tolerance (accumulation is f32, softmax divide is exact).
    assert jnp.allclose(final_out, ref_final, atol=2e-2, rtol=2e-2)
    assert jnp.allclose(combined, ref_combined, atol=1e-2, rtol=2e-2)

    print("KERNEL_OK")
</pallas_src>

<mosaic_0001>
module attributes {stable_mosaic.version = 11 : i64} {
  func.func @fusion_kernel(%arg0: i32, %arg1: memref<8x5xbf16, #tpu.memory_space<vmem>>, %arg2: memref<8x5xbf16, #tpu.memory_space<vmem>>, %arg3: memref<5x64xbf16, #tpu.memory_space<vmem>>, %arg4: memref<5x64xbf16, #tpu.memory_space<vmem>>, %arg5: memref<1x64xf32, #tpu.memory_space<vmem>>, %arg6: memref<64x64xbf16, #tpu.memory_space<vmem>>, %arg7: memref<1x64xf32, #tpu.memory_space<vmem>>, %arg8: memref<1x64xf32, #tpu.memory_space<vmem>>, %arg9: memref<1xf32, #tpu.memory_space<smem>>, %arg10: memref<8x128xf32, #tpu.memory_space<vmem>>) attributes {dimension_semantics = [#tpu.dimension_semantics<parallel>], iteration_bounds = array<i64: 1>, scalar_prefetch = 0 : i64, scratch_operands = 0 : i64, tpu.core_type = #tpu.core_type<tc>, window_params = [{transform_indices = @transform_0, window_bounds = array<i64: 8, 5>}, {transform_indices = @transform_1, window_bounds = array<i64: 8, 5>}, {pipeline_mode = #tpu.pipeline_mode<synchronous>, transform_indices = @transform_2, window_bounds = array<i64: 5, 64>}, {pipeline_mode = #tpu.pipeline_mode<synchronous>, transform_indices = @transform_3, window_bounds = array<i64: 5, 64>}, {pipeline_mode = #tpu.pipeline_mode<synchronous>, transform_indices = @transform_4, window_bounds = array<i64: 1, 64>}, {pipeline_mode = #tpu.pipeline_mode<synchronous>, transform_indices = @transform_5, window_bounds = array<i64: 64, 64>}, {pipeline_mode = #tpu.pipeline_mode<synchronous>, transform_indices = @transform_6, window_bounds = array<i64: 1, 64>}, {pipeline_mode = #tpu.pipeline_mode<synchronous>, transform_indices = @transform_7, window_bounds = array<i64: 1, 64>}, {transform_indices = @transform_8, window_bounds = array<i64: 1>}, {transform_indices = @transform_9, window_bounds = array<i64: 8, 128>}]} {
    %c0 = arith.constant 0 : index
    %c0_0 = arith.constant 0 : index
    %0 = vector.load %arg1[%c0, %c0_0] : memref<8x5xbf16, #tpu.memory_space<vmem>>, vector<8x5xbf16>
    %c0_1 = arith.constant 0 : index
    %c0_2 = arith.constant 0 : index
    %1 = vector.load %arg3[%c0_1, %c0_2] : memref<5x64xbf16, #tpu.memory_space<vmem>>, vector<5x64xbf16>
    %cst = arith.constant dense<0.000000e+00> : vector<8x64xf32>
    %2 = tpu.matmul %0, %1, %cst {dimension_numbers = #tpu.dot_dimension_numbers<[1], [0], [0], [1], [0, 0, 1, 1], [], []>} : vector<8x5xbf16>, vector<5x64xbf16>, vector<8x64xf32> -> vector<8x64xf32>
    %c0_3 = arith.constant 0 : index
    %c0_4 = arith.constant 0 : index
    %3 = vector.load %arg2[%c0_3, %c0_4] : memref<8x5xbf16, #tpu.memory_space<vmem>>, vector<8x5xbf16>
    %c0_5 = arith.constant 0 : index
    %c0_6 = arith.constant 0 : index
    %4 = vector.load %arg4[%c0_5, %c0_6] : memref<5x64xbf16, #tpu.memory_space<vmem>>, vector<5x64xbf16>
    %cst_7 = arith.constant dense<0.000000e+00> : vector<8x64xf32>
    %5 = tpu.matmul %3, %4, %cst_7 {dimension_numbers = #tpu.dot_dimension_numbers<[1], [0], [0], [1], [0, 0, 1, 1], [], []>} : vector<8x5xbf16>, vector<5x64xbf16>, vector<8x64xf32> -> vector<8x64xf32>
    %6 = arith.addf %2, %5 : vector<8x64xf32>
    %c0_8 = arith.constant 0 : index
    %c0_9 = arith.constant 0 : index
    %7 = vector.load %arg5[%c0_8, %c0_9] : memref<1x64xf32, #tpu.memory_space<vmem>>, vector<1x64xf32>
    %8 = vector.broadcast %7 : vector<1x64xf32> to vector<8x64xf32>
    %9 = arith.addf %6, %8 : vector<8x64xf32>
    %cst_10 = arith.constant 0.000000e+00 : f32
    %10 = vector.broadcast %cst_10 : f32 to vector<8x64xf32>
    %11 = arith.maximumf %9, %10 : vector<8x64xf32>
    %12 = arith.truncf %11 : vector<8x64xf32> to vector<8x64xbf16>
    %c0_11 = arith.constant 0 : index
    %c0_12 = arith.constant 0 : index
    %13 = vector.load %arg6[%c0_11, %c0_12] : memref<64x64xbf16, #tpu.memory_space<vmem>>, vector<64x64xbf16>
    %cst_13 = arith.constant dense<0.000000e+00> : vector<8x64xf32>
    %14 = tpu.matmul %12, %13, %cst_13 {dimension_numbers = #tpu.dot_dimension_numbers<[1], [0], [0], [1], [0, 0, 1, 1], [], []>} : vector<8x64xbf16>, vector<64x64xbf16>, vector<8x64xf32> -> vector<8x64xf32>
    %c0_14 = arith.constant 0 : index
    %c0_15 = arith.constant 0 : index
    %15 = vector.load %arg7[%c0_14, %c0_15] : memref<1x64xf32, #tpu.memory_space<vmem>>, vector<1x64xf32>
    %16 = vector.broadcast %15 : vector<1x64xf32> to vector<8x64xf32>
    %17 = arith.addf %14, %16 : vector<8x64xf32>
    %18 = tpu.iota {dimensions = array<i32: 1>} : vector<8x64xi32>
    %c32_i32 = arith.constant 32 : i32
    %19 = vector.broadcast %c32_i32 : i32 to vector<8x64xi32>
    %20 = arith.cmpi slt, %18, %19 : vector<8x64xi32>
    %cst_16 = arith.constant 0xFF800000 : f32
    %21 = vector.broadcast %cst_16 : f32 to vector<8x64xf32>
    %22 = arith.select %20, %17, %21 : vector<8x64xi1>, vector<8x64xf32>
    %cst_17 = arith.constant dense<0xFF800000> : vector<8xf32>
    %23 = vector.multi_reduction <maximumf>, %22, %cst_17 [1] : vector<8x64xf32> to vector<8xf32>
    %24 = vector.shape_cast %23 : vector<8xf32> to vector<8x1xf32>
    %cst_18 = arith.constant 0xFF800000 : f32
    %25 = vector.broadcast %cst_18 : f32 to vector<8x64xf32>
    %26 = arith.select %20, %25, %17 : vector<8x64xi1>, vector<8x64xf32>
    %cst_19 = arith.constant dense<0xFF800000> : vector<8xf32>
    %27 = vector.multi_reduction <maximumf>, %26, %cst_19 [1] : vector<8x64xf32> to vector<8xf32>
    %28 = vector.shape_cast %27 : vector<8xf32> to vector<8x1xf32>
    %29 = vector.shape_cast %24 : vector<8x1xf32> to vector<8x1xf32>
    %30 = vector.broadcast %29 : vector<8x1xf32> to vector<8x64xf32>
    %31 = vector.shape_cast %28 : vector<8x1xf32> to vector<8x1xf32>
    %32 = vector.broadcast %31 : vector<8x1xf32> to vector<8x64xf32>
    %33 = arith.select %20, %30, %32 : vector<8x64xi1>, vector<8x64xf32>
    %34 = arith.subf %17, %33 : vector<8x64xf32>
    %35 = math.exp %34 : vector<8x64xf32>
    %cst_20 = arith.constant 0.000000e+00 : f32
    %36 = vector.broadcast %cst_20 : f32 to vector<8x64xf32>
    %37 = arith.select %20, %35, %36 : vector<8x64xi1>, vector<8x64xf32>
    %cst_21 = arith.constant dense<0.000000e+00> : vector<8xf32>
    %38 = vector.multi_reduction <add>, %37, %cst_21 [1] : vector<8x64xf32> to vector<8xf32>
    %39 = vector.shape_cast %38 : vector<8xf32> to vector<8x1xf32>
    %cst_22 = arith.constant 0.000000e+00 : f32
    %40 = vector.broadcast %cst_22 : f32 to vector<8x64xf32>
    %41 = arith.select %20, %40, %35 : vector<8x64xi1>, vector<8x64xf32>
    %cst_23 = arith.constant dense<0.000000e+00> : vector<8xf32>
    %42 = vector.multi_reduction <add>, %41, %cst_23 [1] : vector<8x64xf32> to vector<8xf32>
    %43 = vector.shape_cast %42 : vector<8xf32> to vector<8x1xf32>
    %44 = vector.shape_cast %39 : vector<8x1xf32> to vector<8x1xf32>
    %45 = vector.broadcast %44 : vector<8x1xf32> to vector<8x64xf32>
    %46 = vector.shape_cast %43 : vector<8x1xf32> to vector<8x1xf32>
    %47 = vector.broadcast %46 : vector<8x1xf32> to vector<8x64xf32>
    %48 = arith.select %20, %45, %47 : vector<8x64xi1>, vector<8x64xf32>
    %49 = arith.divf %35, %48 : vector<8x64xf32>
    %50 = arith.mulf %11, %49 : vector<8x64xf32>
    %c0_24 = arith.constant 0 : index
    %c0_25 = arith.constant 0 : index
    %51 = vector.load %arg8[%c0_24, %c0_25] : memref<1x64xf32, #tpu.memory_space<vmem>>, vector<1x64xf32>
    %52 = vector.broadcast %51 : vector<1x64xf32> to vector<8x64xf32>
    %53 = arith.mulf %50, %52 : vector<8x64xf32>
    %cst_26 = arith.constant dense<0.000000e+00> : vector<8xf32>
    %54 = vector.multi_reduction <add>, %53, %cst_26 [1] : vector<8x64xf32> to vector<8xf32>
    %55 = vector.shape_cast %54 : vector<8xf32> to vector<8x1xf32>
    %c0_27 = arith.constant 0 : index
    %56 = memref.load %arg9[%c0_27] : memref<1xf32, #tpu.memory_space<smem>>
    %57 = vector.broadcast %56 : f32 to vector<8x1xf32>
    %58 = arith.addf %55, %57 : vector<8x1xf32>
    %59 = vector.shape_cast %58 : vector<8x1xf32> to vector<8x1xf32>
    %60 = vector.broadcast %59 : vector<8x1xf32> to vector<8x64xf32>
    %61 = tpu.concatenate %50, %60 in 1 : vector<8x64xf32>, vector<8x64xf32> -> vector<8x128xf32>
    %c0_28 = arith.constant 0 : index
    %c0_29 = arith.constant 0 : index
    %62 = vector.load %arg10[%c0_28, %c0_29] : memref<8x128xf32, #tpu.memory_space<vmem>>, vector<8x128xf32>
    tpu.vector_store %arg10[%c0_28, %c0_29], %61 {strides = array<i32>} : memref<8x128xf32, #tpu.memory_space<vmem>>, vector<8x128xf32>,
    return
  }
  func.func @transform_0(%arg0: i32) -> (i32, i32) {
    %c0_i32 = arith.constant 0 : i32
    %c0_i32_0 = arith.constant 0 : i32
    return %arg0, %c0_i32 : i32, i32
  }
  func.func @transform_1(%arg0: i32) -> (i32, i32) {
    %c0_i32 = arith.constant 0 : i32
    %c0_i32_0 = arith.constant 0 : i32
    return %arg0, %c0_i32 : i32, i32
  }
  func.func @transform_2(%arg0: i32) -> (i32, i32) {
    %c0_i32 = arith.constant 0 : i32
    %c0_i32_0 = arith.constant 0 : i32
    %c0_i32_1 = arith.constant 0 : i32
    return %c0_i32, %c0_i32_0 : i32, i32
  }
  func.func @transform_3(%arg0: i32) -> (i32, i32) {
    %c0_i32 = arith.constant 0 : i32
    %c0_i32_0 = arith.constant 0 : i32
    %c0_i32_1 = arith.constant 0 : i32
    return %c0_i32, %c0_i32_0 : i32, i32
  }
  func.func @transform_4(%arg0: i32) -> (i32, i32) {
    %c0_i32 = arith.constant 0 : i32
    %c0_i32_0 = arith.constant 0 : i32
    %c0_i32_1 = arith.constant 0 : i32
    return %c0_i32, %c0_i32_0 : i32, i32
  }
  func.func @transform_5(%arg0: i32) -> (i32, i32) {
    %c0_i32 = arith.constant 0 : i32
    %c0_i32_0 = arith.constant 0 : i32
    %c0_i32_1 = arith.constant 0 : i32
    return %c0_i32, %c0_i32_0 : i32, i32
  }
  func.func @transform_6(%arg0: i32) -> (i32, i32) {
    %c0_i32 = arith.constant 0 : i32
    %c0_i32_0 = arith.constant 0 : i32
    %c0_i32_1 = arith.constant 0 : i32
    return %c0_i32, %c0_i32_0 : i32, i32
  }
  func.func @transform_7(%arg0: i32) -> (i32, i32) {
    %c0_i32 = arith.constant 0 : i32
    %c0_i32_0 = arith.constant 0 : i32
    %c0_i32_1 = arith.constant 0 : i32
    return %c0_i32, %c0_i32_0 : i32, i32
  }
  func.func @transform_8(%arg0: i32) -> i32 {
    %c0_i32 = arith.constant 0 : i32
    %c0_i32_0 = arith.constant 0 : i32
    return %c0_i32 : i32
  }
  func.func @transform_9(%arg0: i32) -> (i32, i32) {
    %c0_i32 = arith.constant 0 : i32
    %c0_i32_0 = arith.constant 0 : i32
    return %arg0, %c0_i32 : i32, i32
  }
}

</mosaic_0001>

<bundles_post_ra>
// kernel: tpu_custom_call.1
= control target key start
LH: loop header
LB: loop body
LE: loop exit
PB: predicated region body
PF: predicated region fallthrough
CT: control target
= control target key end

     0   :  { %15 = vsyncpa [#allocation4], 0  ;;  %s580_s0 = inlined_call_operand.hbm [shape: bf16[8,5], index: 0, kind: input, shape index: {}]   ;;  %s581_s1 = inlined_call_operand.vmem [shape: bf16[8,5], index: 1, kind: input, shape index: {}]   ;;  %s582_s2 = inlined_call_operand.vmem [shape: bf16[5,64], index: 2, kind: input, shape index: {}]   ;;  %s583_s3 = inlined_call_operand.vmem [shape: bf16[5,64], index: 3, kind: input, shape index: {}]   ;;  %s584_s4 = inlined_call_operand.vmem [shape: f32[1,64], index: 4, kind: input, shape index: {}]   ;;  %s585_s5 = inlined_call_operand.hbm [shape: bf16[64,64], index: 5, kind: input, shape index: {}]   ;;  %s586_s6 = inlined_call_operand.vmem [shape: f32[1,64], index: 6, kind: input, shape index: {}]   ;;  %s587_s7 = inlined_call_operand.vmem [shape: f32[1,64], index: 7, kind: input, shape index: {}]   ;;  %s588_s8 = inlined_call_operand.<no memory space> [shape: f32[1], index: 8, kind: input, shape index: {}]   ;;  %s589_s9 = inlined_call_operand.hbm [shape: f32[8,128], index: 9, kind: output, shape index: {}]  }
   0x1   :  { %16 = vsyncpa [#allocation7], 0 }
   0x2   :  { %17 = vsyncpa [#allocation5], 0  ;;  %s445_s30 = smov [#allocation3]   ;;  %s446_s11 = smov [#allocation6]  }
   0x3   :  { %s24_s10 = sshll.u32 %s445_s30, 4  ;;  %s41_s12 = sshll.u32 %s446_s11, 4  ;;  %s25_s10 = int_to_ptr.vmem [resolvable:$true] %s24_s10  ;;  %s503_s12 = int_to_ptr.vmem [resolvable:$true] %s41_s12 }
   0x4   :  { %s373_s15 = scalar_lea.hbm %s580_s0, 64 }
   0x5   :  { %p374_p0 = scmp.ne.s32.totalorder %s580_s0, %s373_s15  ;;  %p377_p1 = scmp.lt.u32.totalorder %s373_s15, %s580_s0 }
   0x7   :  { %p379_p2 = pnand %p377_p1, %p374_p0 }
   0x9   :  { %382 = shalt.err (!%p379_p2)
}
   0xa   :  { %s383_s20 = scalar_lea.vmem %s25_s10, 64  ;;  %p388_p4 = scmp.lt.s32.totalorder %s25_s10, %s25_s10 }
   0xb   :  { %p384_p3 = scmp.ne.s32.totalorder %s25_s10, %s383_s20  ;;  %p389_p5 = scmp.lt.s32.totalorder %s383_s20, %s383_s20 }
   0xd   :  { %p390_p6 = por %p389_p5, %p388_p4 }
   0xf   :  { %p391_p7 = pnand %p390_p6, %p384_p3 }
  0x11   :  { %394 = shalt.err (!%p391_p7)
}
  0x12   :  { %27 = dma.hbm_to_vmem [thread:$0]  %s580_s0, 64, %s25_s10, [#allocation4]  }
  0x13   :  { %s395_s25 = scalar_lea.hbm %s585_s5, 512 }
  0x14   :  { %p396_p8 = scmp.ne.s32.totalorder %s585_s5, %s395_s25  ;;  %p399_p9 = scmp.lt.u32.totalorder %s395_s25, %s585_s5 }
  0x16   :  { %p401_p10 = pnand %p399_p9, %p396_p8 }
  0x18   :  { %404 = shalt.err (!%p401_p10)
}
  0x19   :  { %s405_s30 = scalar_lea.vmem %s503_s12, 512  ;;  %p410_p12 = scmp.lt.s32.totalorder %s503_s12, %s503_s12 }
  0x1a   :  { %p406_p11 = scmp.ne.s32.totalorder %s503_s12, %s405_s30  ;;  %p411_p13 = scmp.lt.s32.totalorder %s405_s30, %s405_s30 }
  0x1c   :  { %p412_p0 = por %p411_p13, %p410_p12 }
  0x1e   :  { %p413_p1 = pnand %p412_p0, %p406_p11 }
  0x20   :  { %416 = shalt.err (!%p413_p1)
}
  0x21   :  { %s447_s0 = smov 64   ;;  %s448_s10 = smov 4  }
  0x22   :  { %47 = dma.hbm_to_vmem [thread:$0]  %s585_s5, 512, %s503_s12, [#allocation7], %s447_s0, %s447_s0, %s448_s10  }
  0x23   :  { %439 = dma.done.wait [#allocation4], 64  }
  0x24   :  { %440 = vsyncadd [#allocation4], 4294967232 }
  0x25   :  { %441 = dma.done.wait [#allocation7], 512  }
  0x26   :  { %442 = vsyncadd [#allocation7], 4294966784  ;;  %vm69_vm0 = vcmask 1041408   ;;  %v449_v0 = vmov 0.0   ;;  %vm70_vm1 = vcmask 1042432   ;;  %v450_v1 = vmov 65535  }
  0x27   :  { %333 = vmatprep.subr.bf16.mxu1 %v449_v0  ;;  %345 = vmatprep.subr.bf16.mxu0 %v449_v0  ;;  %v71_v2 = vsel %vm69_vm0, 4294967295, %v450_v1  ;;  %vm451_vm2 = vmmov 0   ;;  %v62_v4 = vld [vmem:[%s582_s2] sm:$0x7]  ;;  %vm65_vm3 = vcmask 39936   ;;  %v365_v10 = vld [vmem:[#allocation6] sm:$0xff]   ;;  %v255_v27 = vlaneseq }
  0x28   :  { %335 = vmatprep.mubr.msk.bf16.mxu1 %vm451_vm2, %v449_v0  ;;  %353 = vmatprep.mubr.msk.bf16.mxu0 %vm451_vm2, %v449_v0  ;;  %v72_v3 = vsel %vm70_vm1, %v71_v2, 0  ;;  %v64_v5 = vld [vmem:[%s583_s3] sm:$0x7]  ;;  %v366_v11 = vld [vmem:[#allocation6 + $0x8] sm:$0xff]   ;;  %v367_v12 = vld [vmem:[#allocation6 + $0x10] sm:$0xff]   ;;  %vm211_vm4 = vcmask 523264   ;;  %v294_v58 = vstv %s588_s8 }
  0x29   :  { %v74_v6 = vand.u32 %v72_v3, %v64_v5  ;;  %v63_v7 = vld [vmem:[%s581_s1] sm:$0xf]  ;;  %v120_v8 = vand.u32 %v72_v3, %v62_v4  ;;  %346 = vmatpush3.bf16.msra.mxu0 %v365_v10  ;;  %v256_v28 = vand.u32 127, %v255_v27  ;;  %s452_s21 = smov [#allocation8]  }
  0x2a   :  { %v61_v9 = vld [vmem:[#allocation3] sm:$0xf]  ;;  %347 = vmatprep.subr.bf16.mxu0 %v449_v0  ;;  %s304_s22 = sshll.u32 %s452_s21, 4  ;;  %s305_s22 = int_to_ptr.vmem [resolvable:$true] %s304_s22 }
  0x2b   :  { %334 = vmatpush3.bf16.msra.mxu1 %v74_v6  ;;  %v368_v13 = vld [vmem:[#allocation6 + $0x18] sm:$0xff]   ;;  %vm257_vm5 = vcmp.lt.s32.totalorder %v256_v28, 32  ;;  %s417_s23 = scalar_lea.vmem %s305_s22, 128  ;;  %p422_p3 = scmp.lt.s32.totalorder %s305_s22, %s305_s22 }
  0x2c   :  { %339 = vmatprep.subr.bf16.mxu1 %v449_v0  ;;  %v316_v19 = vld [vmem:[%s584_s4] ss:$0 sm:$0xff]  ;;  %p418_p2 = scmp.ne.s32.totalorder %s305_s22, %s417_s23  ;;  %p423_p4 = scmp.lt.s32.totalorder %s417_s23, %s417_s23 }
  0x2d   :  { %348 = vmatpush3.bf16.msra.mxu0 %v366_v11  ;;  %v317_v29 = vld [vmem:[%s586_s6] ss:$0 sm:$0xff] }
  0x2e   :  { %336 = vmatmul.mubr.msk.bf16.vlgmr.msra.gmra.mrb[0].mxu1 %vm65_vm3, %v63_v7  ;;  %349 = vmatprep.subr.bf16.mxu0 %v449_v0  ;;  %v323_v54 = vld [vmem:[%s587_s7] ss:$0 sm:$0xff]  ;;  %p424_p5 = por %p423_p4, %p422_p3 }
  0x2f   :  { %340 = vmatpush3.bf16.msra.mxu1 %v120_v8  ;;  %341 = vmatprep.mubr.msk.bf16.mxu1 %vm451_vm2, %v449_v0 }
  0x30   :  { %p425_p6 = pnand %p424_p5, %p418_p2 }
  0x31   :  { %350 = vmatpush3.bf16.msra.mxu0 %v367_v12 }
  0x32   :  { %351 = vmatprep.subr.bf16.mxu0 %v449_v0 }
  0x35   :  { %352 = vmatpush3.bf16.msra.mxu0 %v368_v13 }
  0x36   :  { %342 = vmatmul.mubr.msk.bf16.vlgmr.msra.gmra.mrb[4].mxu1 %vm65_vm3, %v61_v9 }
 0x101   :  { %v110_v14 = vpop.f32.mrb[0].mxu1 }
 0x102   :  { %v337_v15 = vpop.f32.mrb[1].mxu1 }
 0x103   :  { %v113_v16 = vpop.f32.mrb[2].mxu1 }
 0x104   :  { %v338_v17 = vpop.f32.mrb[3].mxu1 }
 0x109   :  { %v156_v18 = vpop.f32.mrb[4].mxu1 }
 0x10a   :  { %v157_v20 = vadd.f32 %v156_v18, %v110_v14  ;;  %v343_v21 = vpop.f32.mrb[5].mxu1 }
 0x10b   :  { %v159_v22 = vpop.f32.mrb[6].mxu1 }
 0x10c   :  { %v169_v23 = vadd.f32 %v316_v19, %v157_v20  ;;  %v344_v24 = vpop.f32.mrb[7].mxu1 }
 0x10e   :  { %v170_v25 = vmax.f32 %v169_v23, 0.0 }
 0x110   :  { %v171_v26 = vpack.c.bf16 %v170_v25, %v170_v25 }
 0x112   :  { %354 = vmatmul.mubr.msk.bf16.vlgmr.msra.gmra.mrb[0].mxu0 %vm211_vm4, %v171_v26 }
 0x1e5   :  { %v249_v30 = vpop.f32.mrb[0].mxu0 }
 0x1e6   :  { %v250_v31 = vadd.f32 %v317_v29, %v249_v30  ;;  %v355_v32 = vpop.f32.mrb[1].mxu0 }
 0x1e7   :  { %v252_v33 = vpop.f32.mrb[2].mxu0 }
 0x1e8   :  { %v356_v34 = vpop.f32.mrb[3].mxu0  ;;  %v258_v35 = vsel %vm257_vm5, %v250_v31, -inf  ;;  %v262_v37 = vsel %vm257_vm5, -inf, %v250_v31 }
 0x1e9   :  { %v259_v36 = vsel %vm211_vm4, %v258_v35, -inf  ;;  %v263_v38 = vsel %vm211_vm4, %v262_v37, -inf }
 0x1ea   :  { %260 = vmax.xlane.f32.xlu0 %v259_v36 }
 0x1ee   :  { %264 = vmax.xlane.f32.xlu0 %v263_v38 }
 0x277   :  { %v261_v39 = vpop.xlane.xlu0 %260 }
 0x27b   :  { %v265_v40 = vpop.xlane.xlu0 %264 }
 0x27c   :  { %v266_v41 = vsel %vm257_vm5, %v261_v39, %v265_v40 }
 0x27d   :  { %v267_v42 = vsub.f32 %v250_v31, %v266_v41 }
 0x27f   :  { %v268_v43 = vmul.f32 1.442695, %v267_v42 }
 0x281   :  { %369 = vpow2.f32 %v268_v43 }
 0x28b   :  { %v370_v44 = vpop.eup %369 }
 0x28c   :  { %v270_v45 = vsel %vm257_vm5, %v370_v44, 0.0  ;;  %v274_v47 = vsel %vm257_vm5, 0.0, %v370_v44 }
 0x28d   :  { %v271_v46 = vsel %vm211_vm4, %v270_v45, 0.0  ;;  %v275_v48 = vsel %vm211_vm4, %v274_v47, 0.0 }
 0x28e   :  { %272 = vadd.xlane.f32.xlu1 %v271_v46 }
 0x292   :  { %276 = vadd.xlane.f32.xlu1 %v275_v48 }
 0x31b   :  { %v273_v49 = vpop.xlane.xlu1 %272 }
 0x31f   :  { %v277_v50 = vpop.xlane.xlu1 %276 }
 0x320   :  { %v278_v51 = vsel %vm257_vm5, %v273_v49, %v277_v50 }
 0x321   :  { %371 = vrcp.f32 %v278_v51 }
 0x32b   :  { %v372_v52 = vpop.eup %371 }
 0x32c   :  { %v280_v53 = vmul.f32 %v372_v52, %v370_v44 }
 0x32e   :  { %v281_v55 = vmul.f32 %v280_v53, %v170_v25 }
 0x330   :  { %v289_v56 = vmul.f32 %v323_v54, %v281_v55 }
 0x332   :  { %v290_v57 = vsel %vm211_vm4, %v289_v56, 0.0 }
 0x333   :  { %291 = vadd.xlane.f32.xlu0 %v290_v57 }
 0x3c0   :  { %v292_v59 = vpop.xlane.xlu0 %291 }
 0x3c1   :  { %v295_v60 = vadd.f32 %v294_v58, %v292_v59 }
 0x3c3   :  { %v296_v61 = vsel %vm211_vm4, %v281_v55, %v295_v60 }
 0x3c4   :  { %297 = vst [vmem:[#allocation8] sm:$0xff] %v296_v61 }
 0x3c5   :  { %428 = shalt.err (!%p425_p6)
}
 0x3c6   :  { %s429_s25 = scalar_lea.hbm %s589_s9, 128 }
 0x3c7   :  { %p430_p7 = scmp.ne.s32.totalorder %s589_s9, %s429_s25  ;;  %p433_p8 = scmp.lt.u32.totalorder %s429_s25, %s589_s9 }
 0x3c9   :  { %p435_p9 = pnand %p433_p8, %p430_p7 }
 0x3cb   :  { %438 = shalt.err (!%p435_p9)
}
 0x3cc   :  { %307 = dma.vmem_to_hbm [thread:$0]  %s305_s22, 128, %s589_s9, [#allocation5]  }
 0x3cd   :  { %443 = dma.done.wait [#allocation5], 128  }
 0x3ce   :  { %444 = vsyncadd [#allocation5], 4294967168 }
 0x3cf   :  { %311 = vsyncpa [#allocation4], 1 }
 0x3d0   :  { %312 = vsyncpa [#allocation7], 1 }
 0x3d1   :  { %313 = vsyncpa [#allocation5], 1 }

</bundles_post_ra>
